<compile_context>
chip_gen: v5e
topology: v5e:2x2
jax: 0.10.0
libtpu: 0.0.40
codegen_flags: <defaults>
</compile_context>

<pallas_src>
import math

import jax
import jax.numpy as jnp
from jax.experimental import pallas as pl
from jax.experimental.pallas import tpu as pltpu

NUM_REL = 47          # relation_number in the module
NPAD = 128            # lane-dense padded decoder width
LN_EPS = 1e-12
_INV_SQRT2 = 1.0 / math.sqrt(2.0)
_TANH_C = math.sqrt(2.0 / math.pi)


def _make_kernel(hidden, compute_dtype, exact_gelu):
    inv_h = 1.0 / float(hidden)

    def gelu(x):
        if exact_gelu:
            # Exact erf GELU — matches the PyTorch module bit-for-bit in f32.
            return x * 0.5 * (1.0 + jax.lax.erf(x * _INV_SQRT2))
        # Tanh approximation (EUP tanh; ~1e-3 deviation from erf GELU).
        return x * 0.5 * (1.0 + jnp.tanh(_TANH_C * (x + 0.044715 * (x * x * x))))

    def kernel(c_ref, h_ref, wc_ref, wh_ref, b_ref,
               wdc_ref, wdh_ref, wdp_ref, d_ref, o_ref):
        cd = compute_dtype
        # ---- first two matmuls: cast the f32 tile in-kernel, f32 accumulate --
        child = jnp.dot(c_ref[...].astype(cd), wc_ref[...],
                        preferred_element_type=jnp.float32)
        head = jnp.dot(h_ref[...].astype(cd), wh_ref[...],
                       preferred_element_type=jnp.float32)

        b = b_ref[...]                       # (8, H3) f32; rows 0,1 used
        child = child + b[0:1, :]            # + b_child
        head = head + b[1:2, :]              # + b_head

        child = gelu(child)
        head = gelu(head)
        prod = child * head

        # ---- single-pass LayerNorm stats over the (virtual) concat dim ------
        s = (jnp.sum(child, axis=-1, keepdims=True)
             + jnp.sum(head, axis=-1, keepdims=True)
             + jnp.sum(prod, axis=-1, keepdims=True))
        ss = (jnp.sum(child * child, axis=-1, keepdims=True)
              + jnp.sum(head * head, axis=-1, keepdims=True)
              + jnp.sum(prod * prod, axis=-1, keepdims=True))
        mean = s * inv_h
        var = jnp.maximum(ss * inv_h - mean * mean, 0.0)   # clamp cancellation
        rstd = jax.lax.rsqrt(var + LN_EPS)

        # ---- decoder with the LN affine folded into the weights -------------
        #   y = rstd * (x @ (gamma*Wd^T)) - (rstd*mean) * colsum(gamma*Wd^T)
        #       + (beta @ Wd^T + bias)
        acc = (jnp.dot(child.astype(cd), wdc_ref[...],
                       preferred_element_type=jnp.float32)
               + jnp.dot(head.astype(cd), wdh_ref[...],
                         preferred_element_type=jnp.float32)
               + jnp.dot(prod.astype(cd), wdp_ref[...],
                         preferred_element_type=jnp.float32))
        d = d_ref[...]                       # (8, 128): row0 = s_vec, row1 = b'
        y = rstd * acc - (rstd * mean) * d[0:1, :] + d[1:2, :]
        o_ref[...] = y.astype(o_ref.dtype)

    return kernel


def bert_dep_prediction_head(child, head, params, *, tm=512,
                             compute_dtype=jnp.bfloat16,
                             exact_gelu=False,
                             vmem_limit_bytes=None):
    """child/head: (B, S, H) float32.  Returns (B, S, 47) float32."""
    B, S, H = child.shape
    assert head.shape == (B, S, H)
    H3 = H // 3
    assert 3 * H3 == H, "hidden size must be divisible by 3"
    M = B * S

    # No cast / pad pre-pass: pass the activations through as-is.
    child2 = child.reshape(M, H)
    head2 = head.reshape(M, H)

    # Row tile: multiple of 8, clamped to the problem; ensure >= 2 row tiles
    # where possible (v7x has 2 TensorCores sharded over the "parallel" axis).
    tm_eff = max(8, min(int(tm), ((M + 7) // 8) * 8))
    tm_eff = ((tm_eff + 7) // 8) * 8
    if pl.cdiv(M, tm_eff) < 2 and tm_eff > 8:
        tm_eff = max(8, ((tm_eff // 2 + 7) // 8) * 8)
    grid_m = pl.cdiv(M, tm_eff)

    # ---- host-side one-time parameter prep ----------------------------------
    wc_t = params["w_child"].T.astype(compute_dtype)           # (H, H3)
    wh_t = params["w_head"].T.astype(compute_dtype)            # (H, H3)

    b_pack = jnp.zeros((8, H3), jnp.float32)
    b_pack = b_pack.at[0].set(params["b_child"].astype(jnp.float32))
    b_pack = b_pack.at[1].set(params["b_head"].astype(jnp.float32))

    gamma = params["ln_gamma"].astype(jnp.float32)              # (H,)
    beta = params["ln_beta"].astype(jnp.float32)                # (H,)
    wd_t = params["w_dec"].T.astype(jnp.float32)                # (H, 47)
    wg = gamma[:, None] * wd_t                                  # gamma-folded
    wg_pad = jnp.pad(wg, ((0, 0), (0, NPAD - NUM_REL)))         # (H, 128)
    s_vec = jnp.sum(wg_pad, axis=0)                             # (128,)
    b_vec = jnp.pad(beta @ wd_t + params["bias"].astype(jnp.float32),
                    (0, NPAD - NUM_REL))                        # (128,)
    d_pack = jnp.zeros((8, NPAD), jnp.float32)
    d_pack = d_pack.at[0].set(s_vec)
    d_pack = d_pack.at[1].set(b_vec)

    wg_cd = wg_pad.astype(compute_dtype)
    wd_c, wd_h, wd_p = wg_cd[:H3], wg_cd[H3:2 * H3], wg_cd[2 * H3:]

    kernel = _make_kernel(H, compute_dtype, exact_gelu)

    cp_kwargs = dict(dimension_semantics=("parallel",))
    if vmem_limit_bytes is not None:
        # Large H / tm knob: up to ~64-100 MiB on v5e/v6e; cap ~48-56 MiB on
        # v7x (64 MiB physical VMEM per TensorCore there).
        cp_kwargs["vmem_limit_bytes"] = int(vmem_limit_bytes)

    def run(single_buffer_weights):
        def wspec(shape):
            if single_buffer_weights and hasattr(pl, "Buffered"):
                # Constant block index -> one buffer is enough; halves the
                # resident-weight VMEM footprint.
                return pl.BlockSpec(shape, lambda i: (0, 0),
                                    pipeline_mode=pl.Buffered(1))
            return pl.BlockSpec(shape, lambda i: (0, 0))

        return pl.pallas_call(
            kernel,
            out_shape=jax.ShapeDtypeStruct((M, NPAD), jnp.float32),
            grid_spec=pltpu.PrefetchScalarGridSpec(
                num_scalar_prefetch=0,
                grid=(grid_m,),
                in_specs=[
                    pl.BlockSpec((tm_eff, H), lambda i: (i, 0)),   # child rows
                    pl.BlockSpec((tm_eff, H), lambda i: (i, 0)),   # head rows
                    wspec((H, H3)),        # Wc^T
                    wspec((H, H3)),        # Wh^T
                    wspec((8, H3)),        # packed b_child / b_head
                    wspec((H3, NPAD)),     # gamma-folded Wd^T, child chunk
                    wspec((H3, NPAD)),     # gamma-folded Wd^T, head chunk
                    wspec((H3, NPAD)),     # gamma-folded Wd^T, prod chunk
                    wspec((8, NPAD)),      # packed s_vec / decoder bias'
                ],
                out_specs=pl.BlockSpec((tm_eff, NPAD), lambda i: (i, 0)),
            ),
            compiler_params=pltpu.CompilerParams(**cp_kwargs),
        )(child2, head2, wc_t, wh_t, b_pack, wd_c, wd_h, wd_p, d_pack)

    try:
        out = run(True)
    except Exception:
        # Fallback for Pallas builds that reject single-buffered operands.
        out = run(False)

    return out[:, :NUM_REL].reshape(B, S, NUM_REL)


def _reference(child, head, params):
    """Plain-JAX reference of the module (exact erf GELU, two-pass LN, concat)."""
    B, S, H = child.shape
    c = child.reshape(-1, H) @ params["w_child"].T + params["b_child"]
    h = head.reshape(-1, H) @ params["w_head"].T + params["b_head"]
    c = c * 0.5 * (1.0 + jax.lax.erf(c / math.sqrt(2.0)))
    h = h * 0.5 * (1.0 + jax.lax.erf(h / math.sqrt(2.0)))
    cat = jnp.concatenate([c, h, c * h], axis=-1)
    mean = jnp.mean(cat, axis=-1, keepdims=True)
    var = jnp.mean((cat - mean) ** 2, axis=-1, keepdims=True)
    normed = (cat - mean) / jnp.sqrt(var + LN_EPS) * params["ln_gamma"] + params["ln_beta"]
    y = normed @ params["w_dec"].T + params["bias"]
    return y.reshape(B, S, NUM_REL)


if __name__ == "__main__":
    # Small config: batch=2, seq=8, hidden=48 (divisible by 3 -> H/3 = 16).
    B, S, H = 2, 8, 48
    H3 = H // 3
    key = jax.random.PRNGKey(0)
    kc, kh, kwc, kbc, kwh, kbh, kwd, kbd, kg, kbt = jax.random.split(key, 10)

    child = jax.random.normal(kc, (B, S, H), dtype=jnp.float32)
    head = jax.random.normal(kh, (B, S, H), dtype=jnp.float32)
    params = {
        "w_child": jax.random.normal(kwc, (H3, H), dtype=jnp.float32) * 0.02,
        "b_child": jax.random.normal(kbc, (H3,), dtype=jnp.float32) * 0.02,
        "w_head": jax.random.normal(kwh, (H3, H), dtype=jnp.float32) * 0.02,
        "b_head": jax.random.normal(kbh, (H3,), dtype=jnp.float32) * 0.02,
        # Non-trivial gamma/beta/bias so the folded-LN path is actually tested.
        "ln_gamma": 1.0 + 0.1 * jax.random.normal(kg, (H,), dtype=jnp.float32),
        "ln_beta": 0.1 * jax.random.normal(kbt, (H,), dtype=jnp.float32),
        "w_dec": jax.random.normal(kwd, (NUM_REL, H), dtype=jnp.float32) * 0.02,
        "bias": 0.02 * jax.random.normal(kbd, (NUM_REL,), dtype=jnp.float32),
    }

    ref = _reference(child, head, params)

    # f32 compute + exact erf GELU: parity path with the PyTorch module.
    out_f32 = bert_dep_prediction_head(child, head, params,
                                       compute_dtype=jnp.float32,
                                       exact_gelu=True)
    out_f32 = jax.block_until_ready(out_f32)
    assert out_f32.shape == (B, S, NUM_REL), out_f32.shape
    assert jnp.allclose(out_f32, ref, atol=1e-3, rtol=1e-3), \
        float(jnp.max(jnp.abs(out_f32 - ref)))

    # Default performance path: bf16 MXU (f32 accumulation) + tanh-approx GELU.
    out_fast = bert_dep_prediction_head(child, head, params)
    out_fast = jax.block_until_ready(out_fast)
    assert out_fast.shape == (B, S, NUM_REL), out_fast.shape
    assert jnp.allclose(out_fast, ref, atol=3e-2, rtol=3e-2), \
        float(jnp.max(jnp.abs(out_fast - ref)))

    print("KERNEL_OK")
</pallas_src>

<mosaic_0001>
module attributes {stable_mosaic.version = 11 : i64} {
  func.func @kernel(%arg0: i32, %arg1: memref<8x48xf32, #tpu.memory_space<vmem>>, %arg2: memref<8x48xf32, #tpu.memory_space<vmem>>, %arg3: memref<48x16xf32, #tpu.memory_space<vmem>>, %arg4: memref<48x16xf32, #tpu.memory_space<vmem>>, %arg5: memref<8x16xf32, #tpu.memory_space<vmem>>, %arg6: memref<16x128xf32, #tpu.memory_space<vmem>>, %arg7: memref<16x128xf32, #tpu.memory_space<vmem>>, %arg8: memref<16x128xf32, #tpu.memory_space<vmem>>, %arg9: memref<8x128xf32, #tpu.memory_space<vmem>>, %arg10: memref<8x128xf32, #tpu.memory_space<vmem>>) attributes {dimension_semantics = [#tpu.dimension_semantics<parallel>], iteration_bounds = array<i64: 2>, scalar_prefetch = 0 : i64, scratch_operands = 0 : i64, tpu.core_type = #tpu.core_type<tc>, window_params = [{transform_indices = @transform_0, window_bounds = array<i64: 8, 48>}, {transform_indices = @transform_1, window_bounds = array<i64: 8, 48>}, {pipeline_mode = #tpu.pipeline_mode<synchronous>, transform_indices = @transform_2, window_bounds = array<i64: 48, 16>}, {pipeline_mode = #tpu.pipeline_mode<synchronous>, transform_indices = @transform_3, window_bounds = array<i64: 48, 16>}, {pipeline_mode = #tpu.pipeline_mode<synchronous>, transform_indices = @transform_4, window_bounds = array<i64: 8, 16>}, {pipeline_mode = #tpu.pipeline_mode<synchronous>, transform_indices = @transform_5, window_bounds = array<i64: 16, 128>}, {pipeline_mode = #tpu.pipeline_mode<synchronous>, transform_indices = @transform_6, window_bounds = array<i64: 16, 128>}, {pipeline_mode = #tpu.pipeline_mode<synchronous>, transform_indices = @transform_7, window_bounds = array<i64: 16, 128>}, {pipeline_mode = #tpu.pipeline_mode<synchronous>, transform_indices = @transform_8, window_bounds = array<i64: 8, 128>}, {transform_indices = @transform_9, window_bounds = array<i64: 8, 128>}]} {
    %c0 = arith.constant 0 : index
    %c0_0 = arith.constant 0 : index
    %0 = vector.load %arg1[%c0, %c0_0] : memref<8x48xf32, #tpu.memory_space<vmem>>, vector<8x48xf32>
    %c0_1 = arith.constant 0 : index
    %c0_2 = arith.constant 0 : index
    %1 = vector.load %arg3[%c0_1, %c0_2] : memref<48x16xf32, #tpu.memory_space<vmem>>, vector<48x16xf32>
    %cst = arith.constant dense<0.000000e+00> : vector<8x16xf32>
    %2 = tpu.matmul %0, %1, %cst {dimension_numbers = #tpu.dot_dimension_numbers<[1], [0], [0], [1], [0, 0, 1, 1], [], []>} : vector<8x48xf32>, vector<48x16xf32>, vector<8x16xf32> -> vector<8x16xf32>
    %c0_3 = arith.constant 0 : index
    %c0_4 = arith.constant 0 : index
    %3 = vector.load %arg2[%c0_3, %c0_4] : memref<8x48xf32, #tpu.memory_space<vmem>>, vector<8x48xf32>
    %c0_5 = arith.constant 0 : index
    %c0_6 = arith.constant 0 : index
    %4 = vector.load %arg4[%c0_5, %c0_6] : memref<48x16xf32, #tpu.memory_space<vmem>>, vector<48x16xf32>
    %cst_7 = arith.constant dense<0.000000e+00> : vector<8x16xf32>
    %5 = tpu.matmul %3, %4, %cst_7 {dimension_numbers = #tpu.dot_dimension_numbers<[1], [0], [0], [1], [0, 0, 1, 1], [], []>} : vector<8x48xf32>, vector<48x16xf32>, vector<8x16xf32> -> vector<8x16xf32>
    %c0_8 = arith.constant 0 : index
    %c0_9 = arith.constant 0 : index
    %6 = vector.load %arg5[%c0_8, %c0_9] : memref<8x16xf32, #tpu.memory_space<vmem>>, vector<8x16xf32>
    %7 = vector.extract_strided_slice %6 {offsets = [0, 0], sizes = [1, 16], strides = [1, 1]} : vector<8x16xf32> to vector<1x16xf32>
    %8 = vector.broadcast %7 : vector<1x16xf32> to vector<8x16xf32>
    %9 = arith.addf %2, %8 : vector<8x16xf32>
    %10 = vector.extract_strided_slice %6 {offsets = [1, 0], sizes = [1, 16], strides = [1, 1]} : vector<8x16xf32> to vector<1x16xf32>
    %11 = vector.broadcast %10 : vector<1x16xf32> to vector<8x16xf32>
    %12 = arith.addf %5, %11 : vector<8x16xf32>
    %cst_10 = arith.constant 5.000000e-01 : f32
    %13 = vector.broadcast %cst_10 : f32 to vector<8x16xf32>
    %14 = arith.mulf %9, %13 : vector<8x16xf32>
    %cst_11 = arith.constant 0.707106769 : f32
    %15 = vector.broadcast %cst_11 : f32 to vector<8x16xf32>
    %16 = arith.mulf %9, %15 : vector<8x16xf32>
    %17 = math.erf %16 : vector<8x16xf32>
    %cst_12 = arith.constant 1.000000e+00 : f32
    %18 = vector.broadcast %cst_12 : f32 to vector<8x16xf32>
    %19 = arith.addf %18, %17 : vector<8x16xf32>
    %20 = arith.mulf %14, %19 : vector<8x16xf32>
    %cst_13 = arith.constant 5.000000e-01 : f32
    %21 = vector.broadcast %cst_13 : f32 to vector<8x16xf32>
    %22 = arith.mulf %12, %21 : vector<8x16xf32>
    %cst_14 = arith.constant 0.707106769 : f32
    %23 = vector.broadcast %cst_14 : f32 to vector<8x16xf32>
    %24 = arith.mulf %12, %23 : vector<8x16xf32>
    %25 = math.erf %24 : vector<8x16xf32>
    %cst_15 = arith.constant 1.000000e+00 : f32
    %26 = vector.broadcast %cst_15 : f32 to vector<8x16xf32>
    %27 = arith.addf %26, %25 : vector<8x16xf32>
    %28 = arith.mulf %22, %27 : vector<8x16xf32>
    %29 = arith.mulf %20, %28 : vector<8x16xf32>
    %cst_16 = arith.constant dense<0.000000e+00> : vector<8xf32>
    %30 = vector.multi_reduction <add>, %20, %cst_16 [1] : vector<8x16xf32> to vector<8xf32>
    %31 = vector.shape_cast %30 : vector<8xf32> to vector<8x1xf32>
    %cst_17 = arith.constant dense<0.000000e+00> : vector<8xf32>
    %32 = vector.multi_reduction <add>, %28, %cst_17 [1] : vector<8x16xf32> to vector<8xf32>
    %33 = vector.shape_cast %32 : vector<8xf32> to vector<8x1xf32>
    %34 = arith.addf %31, %33 : vector<8x1xf32>
    %cst_18 = arith.constant dense<0.000000e+00> : vector<8xf32>
    %35 = vector.multi_reduction <add>, %29, %cst_18 [1] : vector<8x16xf32> to vector<8xf32>
    %36 = vector.shape_cast %35 : vector<8xf32> to vector<8x1xf32>
    %37 = arith.addf %34, %36 : vector<8x1xf32>
    %38 = arith.mulf %20, %20 : vector<8x16xf32>
    %cst_19 = arith.constant dense<0.000000e+00> : vector<8xf32>
    %39 = vector.multi_reduction <add>, %38, %cst_19 [1] : vector<8x16xf32> to vector<8xf32>
    %40 = vector.shape_cast %39 : vector<8xf32> to vector<8x1xf32>
    %41 = arith.mulf %28, %28 : vector<8x16xf32>
    %cst_20 = arith.constant dense<0.000000e+00> : vector<8xf32>
    %42 = vector.multi_reduction <add>, %41, %cst_20 [1] : vector<8x16xf32> to vector<8xf32>
    %43 = vector.shape_cast %42 : vector<8xf32> to vector<8x1xf32>
    %44 = arith.addf %40, %43 : vector<8x1xf32>
    %45 = arith.mulf %29, %29 : vector<8x16xf32>
    %cst_21 = arith.constant dense<0.000000e+00> : vector<8xf32>
    %46 = vector.multi_reduction <add>, %45, %cst_21 [1] : vector<8x16xf32> to vector<8xf32>
    %47 = vector.shape_cast %46 : vector<8xf32> to vector<8x1xf32>
    %48 = arith.addf %44, %47 : vector<8x1xf32>
    %cst_22 = arith.constant 0.020833334 : f32
    %49 = vector.broadcast %cst_22 : f32 to vector<8x1xf32>
    %50 = arith.mulf %37, %49 : vector<8x1xf32>
    %cst_23 = arith.constant 0.020833334 : f32
    %51 = vector.broadcast %cst_23 : f32 to vector<8x1xf32>
    %52 = arith.mulf %48, %51 : vector<8x1xf32>
    %53 = arith.mulf %50, %50 : vector<8x1xf32>
    %54 = arith.subf %52, %53 : vector<8x1xf32>
    %cst_24 = arith.constant 0.000000e+00 : f32
    %55 = vector.broadcast %cst_24 : f32 to vector<8x1xf32>
    %56 = arith.maximumf %54, %55 : vector<8x1xf32>
    %cst_25 = arith.constant 9.99999996E-13 : f32
    %57 = vector.broadcast %cst_25 : f32 to vector<8x1xf32>
    %58 = arith.addf %56, %57 : vector<8x1xf32>
    %59 = math.rsqrt %58 : vector<8x1xf32>
    %c0_26 = arith.constant 0 : index
    %c0_27 = arith.constant 0 : index
    %60 = vector.load %arg6[%c0_26, %c0_27] : memref<16x128xf32, #tpu.memory_space<vmem>>, vector<16x128xf32>
    %cst_28 = arith.constant dense<0.000000e+00> : vector<8x128xf32>
    %61 = tpu.matmul %20, %60, %cst_28 {dimension_numbers = #tpu.dot_dimension_numbers<[1], [0], [0], [1], [0, 0, 1, 1], [], []>} : vector<8x16xf32>, vector<16x128xf32>, vector<8x128xf32> -> vector<8x128xf32>
    %c0_29 = arith.constant 0 : index
    %c0_30 = arith.constant 0 : index
    %62 = vector.load %arg7[%c0_29, %c0_30] : memref<16x128xf32, #tpu.memory_space<vmem>>, vector<16x128xf32>
    %cst_31 = arith.constant dense<0.000000e+00> : vector<8x128xf32>
    %63 = tpu.matmul %28, %62, %cst_31 {dimension_numbers = #tpu.dot_dimension_numbers<[1], [0], [0], [1], [0, 0, 1, 1], [], []>} : vector<8x16xf32>, vector<16x128xf32>, vector<8x128xf32> -> vector<8x128xf32>
    %64 = arith.addf %61, %63 : vector<8x128xf32>
    %c0_32 = arith.constant 0 : index
    %c0_33 = arith.constant 0 : index
    %65 = vector.load %arg8[%c0_32, %c0_33] : memref<16x128xf32, #tpu.memory_space<vmem>>, vector<16x128xf32>
    %cst_34 = arith.constant dense<0.000000e+00> : vector<8x128xf32>
    %66 = tpu.matmul %29, %65, %cst_34 {dimension_numbers = #tpu.dot_dimension_numbers<[1], [0], [0], [1], [0, 0, 1, 1], [], []>} : vector<8x16xf32>, vector<16x128xf32>, vector<8x128xf32> -> vector<8x128xf32>
    %67 = arith.addf %64, %66 : vector<8x128xf32>
    %c0_35 = arith.constant 0 : index
    %c0_36 = arith.constant 0 : index
    %68 = vector.load %arg9[%c0_35, %c0_36] : memref<8x128xf32, #tpu.memory_space<vmem>>, vector<8x128xf32>
    %69 = vector.broadcast %59 : vector<8x1xf32> to vector<8x128xf32>
    %70 = arith.mulf %69, %67 : vector<8x128xf32>
    %71 = arith.mulf %59, %50 : vector<8x1xf32>
    %72 = vector.extract_strided_slice %68 {offsets = [0, 0], sizes = [1, 128], strides = [1, 1]} : vector<8x128xf32> to vector<1x128xf32>
    %73 = vector.broadcast %71 : vector<8x1xf32> to vector<8x128xf32>
    %74 = vector.broadcast %72 : vector<1x128xf32> to vector<8x128xf32>
    %75 = arith.mulf %73, %74 : vector<8x128xf32>
    %76 = arith.subf %70, %75 : vector<8x128xf32>
    %77 = vector.extract_strided_slice %68 {offsets = [1, 0], sizes = [1, 128], strides = [1, 1]} : vector<8x128xf32> to vector<1x128xf32>
    %78 = vector.broadcast %77 : vector<1x128xf32> to vector<8x128xf32>
    %79 = arith.addf %76, %78 : vector<8x128xf32>
    %c0_37 = arith.constant 0 : index
    %c0_38 = arith.constant 0 : index
    %80 = vector.load %arg10[%c0_37, %c0_38] : memref<8x128xf32, #tpu.memory_space<vmem>>, vector<8x128xf32>
    tpu.vector_store %arg10[%c0_37, %c0_38], %79 {strides = array<i32>} : memref<8x128xf32, #tpu.memory_space<vmem>>, vector<8x128xf32>,
    return
  }
  func.func @transform_0(%arg0: i32) -> (i32, i32) {
    %c0_i32 = arith.constant 0 : i32
    %c0_i32_0 = arith.constant 0 : i32
    return %arg0, %c0_i32 : i32, i32
  }
  func.func @transform_1(%arg0: i32) -> (i32, i32) {
    %c0_i32 = arith.constant 0 : i32
    %c0_i32_0 = arith.constant 0 : i32
    return %arg0, %c0_i32 : i32, i32
  }
  func.func @transform_2(%arg0: i32) -> (i32, i32) {
    %c0_i32 = arith.constant 0 : i32
    %c0_i32_0 = arith.constant 0 : i32
    %c0_i32_1 = arith.constant 0 : i32
    return %c0_i32, %c0_i32_0 : i32, i32
  }
  func.func @transform_3(%arg0: i32) -> (i32, i32) {
    %c0_i32 = arith.constant 0 : i32
    %c0_i32_0 = arith.constant 0 : i32
    %c0_i32_1 = arith.constant 0 : i32
    return %c0_i32, %c0_i32_0 : i32, i32
  }
  func.func @transform_4(%arg0: i32) -> (i32, i32) {
    %c0_i32 = arith.constant 0 : i32
    %c0_i32_0 = arith.constant 0 : i32
    %c0_i32_1 = arith.constant 0 : i32
    return %c0_i32, %c0_i32_0 : i32, i32
  }
  func.func @transform_5(%arg0: i32) -> (i32, i32) {
    %c0_i32 = arith.constant 0 : i32
    %c0_i32_0 = arith.constant 0 : i32
    %c0_i32_1 = arith.constant 0 : i32
    return %c0_i32, %c0_i32_0 : i32, i32
  }
  func.func @transform_6(%arg0: i32) -> (i32, i32) {
    %c0_i32 = arith.constant 0 : i32
    %c0_i32_0 = arith.constant 0 : i32
    %c0_i32_1 = arith.constant 0 : i32
    return %c0_i32, %c0_i32_0 : i32, i32
  }
  func.func @transform_7(%arg0: i32) -> (i32, i32) {
    %c0_i32 = arith.constant 0 : i32
    %c0_i32_0 = arith.constant 0 : i32
    %c0_i32_1 = arith.constant 0 : i32
    return %c0_i32, %c0_i32_0 : i32, i32
  }
  func.func @transform_8(%arg0: i32) -> (i32, i32) {
    %c0_i32 = arith.constant 0 : i32
    %c0_i32_0 = arith.constant 0 : i32
    %c0_i32_1 = arith.constant 0 : i32
    return %c0_i32, %c0_i32_0 : i32, i32
  }
  func.func @transform_9(%arg0: i32) -> (i32, i32) {
    %c0_i32 = arith.constant 0 : i32
    %c0_i32_0 = arith.constant 0 : i32
    return %arg0, %c0_i32 : i32, i32
  }
}

module attributes {stable_mosaic.version = 11 : i64} {
  func.func @kernel(%arg0: i32, %arg1: memref<8x48xf32, #tpu.memory_space<vmem>>, %arg2: memref<8x48xf32, #tpu.memory_space<vmem>>, %arg3: memref<48x16xf32, #tpu.memory_space<vmem>>, %arg4: memref<48x16xf32, #tpu.memory_space<vmem>>, %arg5: memref<8x16xf32, #tpu.memory_space<vmem>>, %arg6: memref<16x128xf32, #tpu.memory_space<vmem>>, %arg7: memref<16x128xf32, #tpu.memory_space<vmem>>, %arg8: memref<16x128xf32, #tpu.memory_space<vmem>>, %arg9: memref<8x128xf32, #tpu.memory_space<vmem>>, %arg10: memref<8x128xf32, #tpu.memory_space<vmem>>) attributes {dimension_semantics = [#tpu.dimension_semantics<parallel>], iteration_bounds = array<i64: 2>, scalar_prefetch = 0 : i64, scratch_operands = 0 : i64, tpu.core_type = #tpu.core_type<tc>, window_params = [{transform_indices = @transform_0, window_bounds = array<i64: 8, 48>}, {transform_indices = @transform_1, window_bounds = array<i64: 8, 48>}, {pipeline_mode = #tpu.pipeline_mode<synchronous>, transform_indices = @transform_2, window_bounds = array<i64: 48, 16>}, {pipeline_mode = #tpu.pipeline_mode<synchronous>, transform_indices = @transform_3, window_bounds = array<i64: 48, 16>}, {pipeline_mode = #tpu.pipeline_mode<synchronous>, transform_indices = @transform_4, window_bounds = array<i64: 8, 16>}, {pipeline_mode = #tpu.pipeline_mode<synchronous>, transform_indices = @transform_5, window_bounds = array<i64: 16, 128>}, {pipeline_mode = #tpu.pipeline_mode<synchronous>, transform_indices = @transform_6, window_bounds = array<i64: 16, 128>}, {pipeline_mode = #tpu.pipeline_mode<synchronous>, transform_indices = @transform_7, window_bounds = array<i64: 16, 128>}, {pipeline_mode = #tpu.pipeline_mode<synchronous>, transform_indices = @transform_8, window_bounds = array<i64: 8, 128>}, {transform_indices = @transform_9, window_bounds = array<i64: 8, 128>}]} {
    %c0 = arith.constant 0 : index
    %c0_0 = arith.constant 0 : index
    %0 = vector.load %arg1[%c0, %c0_0] : memref<8x48xf32, #tpu.memory_space<vmem>>, vector<8x48xf32>
    %c0_1 = arith.constant 0 : index
    %c0_2 = arith.constant 0 : index
    %1 = vector.load %arg3[%c0_1, %c0_2] : memref<48x16xf32, #tpu.memory_space<vmem>>, vector<48x16xf32>
    %cst = arith.constant dense<0.000000e+00> : vector<8x16xf32>
    %2 = tpu.matmul %0, %1, %cst {dimension_numbers = #tpu.dot_dimension_numbers<[1], [0], [0], [1], [0, 0, 1, 1], [], []>} : vector<8x48xf32>, vector<48x16xf32>, vector<8x16xf32> -> vector<8x16xf32>
    %c0_3 = arith.constant 0 : index
    %c0_4 = arith.constant 0 : index
    %3 = vector.load %arg2[%c0_3, %c0_4] : memref<8x48xf32, #tpu.memory_space<vmem>>, vector<8x48xf32>
    %c0_5 = arith.constant 0 : index
    %c0_6 = arith.constant 0 : index
    %4 = vector.load %arg4[%c0_5, %c0_6] : memref<48x16xf32, #tpu.memory_space<vmem>>, vector<48x16xf32>
    %cst_7 = arith.constant dense<0.000000e+00> : vector<8x16xf32>
    %5 = tpu.matmul %3, %4, %cst_7 {dimension_numbers = #tpu.dot_dimension_numbers<[1], [0], [0], [1], [0, 0, 1, 1], [], []>} : vector<8x48xf32>, vector<48x16xf32>, vector<8x16xf32> -> vector<8x16xf32>
    %c0_8 = arith.constant 0 : index
    %c0_9 = arith.constant 0 : index
    %6 = vector.load %arg5[%c0_8, %c0_9] : memref<8x16xf32, #tpu.memory_space<vmem>>, vector<8x16xf32>
    %7 = vector.extract_strided_slice %6 {offsets = [0, 0], sizes = [1, 16], strides = [1, 1]} : vector<8x16xf32> to vector<1x16xf32>
    %8 = vector.broadcast %7 : vector<1x16xf32> to vector<8x16xf32>
    %9 = arith.addf %2, %8 : vector<8x16xf32>
    %10 = vector.extract_strided_slice %6 {offsets = [1, 0], sizes = [1, 16], strides = [1, 1]} : vector<8x16xf32> to vector<1x16xf32>
    %11 = vector.broadcast %10 : vector<1x16xf32> to vector<8x16xf32>
    %12 = arith.addf %5, %11 : vector<8x16xf32>
    %cst_10 = arith.constant 5.000000e-01 : f32
    %13 = vector.broadcast %cst_10 : f32 to vector<8x16xf32>
    %14 = arith.mulf %9, %13 : vector<8x16xf32>
    %cst_11 = arith.constant 0.707106769 : f32
    %15 = vector.broadcast %cst_11 : f32 to vector<8x16xf32>
    %16 = arith.mulf %9, %15 : vector<8x16xf32>
    %17 = math.erf %16 : vector<8x16xf32>
    %cst_12 = arith.constant 1.000000e+00 : f32
    %18 = vector.broadcast %cst_12 : f32 to vector<8x16xf32>
    %19 = arith.addf %18, %17 : vector<8x16xf32>
    %20 = arith.mulf %14, %19 : vector<8x16xf32>
    %cst_13 = arith.constant 5.000000e-01 : f32
    %21 = vector.broadcast %cst_13 : f32 to vector<8x16xf32>
    %22 = arith.mulf %12, %21 : vector<8x16xf32>
    %cst_14 = arith.constant 0.707106769 : f32
    %23 = vector.broadcast %cst_14 : f32 to vector<8x16xf32>
    %24 = arith.mulf %12, %23 : vector<8x16xf32>
    %25 = math.erf %24 : vector<8x16xf32>
    %cst_15 = arith.constant 1.000000e+00 : f32
    %26 = vector.broadcast %cst_15 : f32 to vector<8x16xf32>
    %27 = arith.addf %26, %25 : vector<8x16xf32>
    %28 = arith.mulf %22, %27 : vector<8x16xf32>
    %29 = arith.mulf %20, %28 : vector<8x16xf32>
    %cst_16 = arith.constant dense<0.000000e+00> : vector<8xf32>
    %30 = vector.multi_reduction <add>, %20, %cst_16 [1] : vector<8x16xf32> to vector<8xf32>
    %31 = vector.shape_cast %30 : vector<8xf32> to vector<8x1xf32>
    %cst_17 = arith.constant dense<0.000000e+00> : vector<8xf32>
    %32 = vector.multi_reduction <add>, %28, %cst_17 [1] : vector<8x16xf32> to vector<8xf32>
    %33 = vector.shape_cast %32 : vector<8xf32> to vector<8x1xf32>
    %34 = arith.addf %31, %33 : vector<8x1xf32>
    %cst_18 = arith.constant dense<0.000000e+00> : vector<8xf32>
    %35 = vector.multi_reduction <add>, %29, %cst_18 [1] : vector<8x16xf32> to vector<8xf32>
    %36 = vector.shape_cast %35 : vector<8xf32> to vector<8x1xf32>
    %37 = arith.addf %34, %36 : vector<8x1xf32>
    %38 = arith.mulf %20, %20 : vector<8x16xf32>
    %cst_19 = arith.constant dense<0.000000e+00> : vector<8xf32>
    %39 = vector.multi_reduction <add>, %38, %cst_19 [1] : vector<8x16xf32> to vector<8xf32>
    %40 = vector.shape_cast %39 : vector<8xf32> to vector<8x1xf32>
    %41 = arith.mulf %28, %28 : vector<8x16xf32>
    %cst_20 = arith.constant dense<0.000000e+00> : vector<8xf32>
    %42 = vector.multi_reduction <add>, %41, %cst_20 [1] : vector<8x16xf32> to vector<8xf32>
    %43 = vector.shape_cast %42 : vector<8xf32> to vector<8x1xf32>
    %44 = arith.addf %40, %43 : vector<8x1xf32>
    %45 = arith.mulf %29, %29 : vector<8x16xf32>
    %cst_21 = arith.constant dense<0.000000e+00> : vector<8xf32>
    %46 = vector.multi_reduction <add>, %45, %cst_21 [1] : vector<8x16xf32> to vector<8xf32>
    %47 = vector.shape_cast %46 : vector<8xf32> to vector<8x1xf32>
    %48 = arith.addf %44, %47 : vector<8x1xf32>
    %cst_22 = arith.constant 0.020833334 : f32
    %49 = vector.broadcast %cst_22 : f32 to vector<8x1xf32>
    %50 = arith.mulf %37, %49 : vector<8x1xf32>
    %cst_23 = arith.constant 0.020833334 : f32
    %51 = vector.broadcast %cst_23 : f32 to vector<8x1xf32>
    %52 = arith.mulf %48, %51 : vector<8x1xf32>
    %53 = arith.mulf %50, %50 : vector<8x1xf32>
    %54 = arith.subf %52, %53 : vector<8x1xf32>
    %cst_24 = arith.constant 0.000000e+00 : f32
    %55 = vector.broadcast %cst_24 : f32 to vector<8x1xf32>
    %56 = arith.maximumf %54, %55 : vector<8x1xf32>
    %cst_25 = arith.constant 9.99999996E-13 : f32
    %57 = vector.broadcast %cst_25 : f32 to vector<8x1xf32>
    %58 = arith.addf %56, %57 : vector<8x1xf32>
    %59 = math.rsqrt %58 : vector<8x1xf32>
    %c0_26 = arith.constant 0 : index
    %c0_27 = arith.constant 0 : index
    %60 = vector.load %arg6[%c0_26, %c0_27] : memref<16x128xf32, #tpu.memory_space<vmem>>, vector<16x128xf32>
    %cst_28 = arith.constant dense<0.000000e+00> : vector<8x128xf32>
    %61 = tpu.matmul %20, %60, %cst_28 {dimension_numbers = #tpu.dot_dimension_numbers<[1], [0], [0], [1], [0, 0, 1, 1], [], []>} : vector<8x16xf32>, vector<16x128xf32>, vector<8x128xf32> -> vector<8x128xf32>
    %c0_29 = arith.constant 0 : index
    %c0_30 = arith.constant 0 : index
    %62 = vector.load %arg7[%c0_29, %c0_30] : memref<16x128xf32, #tpu.memory_space<vmem>>, vector<16x128xf32>
    %cst_31 = arith.constant dense<0.000000e+00> : vector<8x128xf32>
    %63 = tpu.matmul %28, %62, %cst_31 {dimension_numbers = #tpu.dot_dimension_numbers<[1], [0], [0], [1], [0, 0, 1, 1], [], []>} : vector<8x16xf32>, vector<16x128xf32>, vector<8x128xf32> -> vector<8x128xf32>
    %64 = arith.addf %61, %63 : vector<8x128xf32>
    %c0_32 = arith.constant 0 : index
    %c0_33 = arith.constant 0 : index
    %65 = vector.load %arg8[%c0_32, %c0_33] : memref<16x128xf32, #tpu.memory_space<vmem>>, vector<16x128xf32>
    %cst_34 = arith.constant dense<0.000000e+00> : vector<8x128xf32>
    %66 = tpu.matmul %29, %65, %cst_34 {dimension_numbers = #tpu.dot_dimension_numbers<[1], [0], [0], [1], [0, 0, 1, 1], [], []>} : vector<8x16xf32>, vector<16x128xf32>, vector<8x128xf32> -> vector<8x128xf32>
    %67 = arith.addf %64, %66 : vector<8x128xf32>
    %c0_35 = arith.constant 0 : index
    %c0_36 = arith.constant 0 : index
    %68 = vector.load %arg9[%c0_35, %c0_36] : memref<8x128xf32, #tpu.memory_space<vmem>>, vector<8x128xf32>
    %69 = vector.broadcast %59 : vector<8x1xf32> to vector<8x128xf32>
    %70 = arith.mulf %69, %67 : vector<8x128xf32>
    %71 = arith.mulf %59, %50 : vector<8x1xf32>
    %72 = vector.extract_strided_slice %68 {offsets = [0, 0], sizes = [1, 128], strides = [1, 1]} : vector<8x128xf32> to vector<1x128xf32>
    %73 = vector.broadcast %71 : vector<8x1xf32> to vector<8x128xf32>
    %74 = vector.broadcast %72 : vector<1x128xf32> to vector<8x128xf32>
    %75 = arith.mulf %73, %74 : vector<8x128xf32>
    %76 = arith.subf %70, %75 : vector<8x128xf32>
    %77 = vector.extract_strided_slice %68 {offsets = [1, 0], sizes = [1, 128], strides = [1, 1]} : vector<8x128xf32> to vector<1x128xf32>
    %78 = vector.broadcast %77 : vector<1x128xf32> to vector<8x128xf32>
    %79 = arith.addf %76, %78 : vector<8x128xf32>
    %c0_37 = arith.constant 0 : index
    %c0_38 = arith.constant 0 : index
    %80 = vector.load %arg10[%c0_37, %c0_38] : memref<8x128xf32, #tpu.memory_space<vmem>>, vector<8x128xf32>
    tpu.vector_store %arg10[%c0_37, %c0_38], %79 {strides = array<i32>} : memref<8x128xf32, #tpu.memory_space<vmem>>, vector<8x128xf32>,
    return
  }
  func.func @transform_0(%arg0: i32) -> (i32, i32) {
    %c0_i32 = arith.constant 0 : i32
    %c0_i32_0 = arith.constant 0 : i32
    return %arg0, %c0_i32 : i32, i32
  }
  func.func @transform_1(%arg0: i32) -> (i32, i32) {
    %c0_i32 = arith.constant 0 : i32
    %c0_i32_0 = arith.constant 0 : i32
    return %arg0, %c0_i32 : i32, i32
  }
  func.func @transform_2(%arg0: i32) -> (i32, i32) {
    %c0_i32 = arith.constant 0 : i32
    %c0_i32_0 = arith.constant 0 : i32
    %c0_i32_1 = arith.constant 0 : i32
    return %c0_i32, %c0_i32_0 : i32, i32
  }
  func.func @transform_3(%arg0: i32) -> (i32, i32) {
    %c0_i32 = arith.constant 0 : i32
    %c0_i32_0 = arith.constant 0 : i32
    %c0_i32_1 = arith.constant 0 : i32
    return %c0_i32, %c0_i32_0 : i32, i32
  }
  func.func @transform_4(%arg0: i32) -> (i32, i32) {
    %c0_i32 = arith.constant 0 : i32
    %c0_i32_0 = arith.constant 0 : i32
    %c0_i32_1 = arith.constant 0 : i32
    return %c0_i32, %c0_i32_0 : i32, i32
  }
  func.func @transform_5(%arg0: i32) -> (i32, i32) {
    %c0_i32 = arith.constant 0 : i32
    %c0_i32_0 = arith.constant 0 : i32
    %c0_i32_1 = arith.constant 0 : i32
    return %c0_i32, %c0_i32_0 : i32, i32
  }
  func.func @transform_6(%arg0: i32) -> (i32, i32) {
    %c0_i32 = arith.constant 0 : i32
    %c0_i32_0 = arith.constant 0 : i32
    %c0_i32_1 = arith.constant 0 : i32
    return %c0_i32, %c0_i32_0 : i32, i32
  }
  func.func @transform_7(%arg0: i32) -> (i32, i32) {
    %c0_i32 = arith.constant 0 : i32
    %c0_i32_0 = arith.constant 0 : i32
    %c0_i32_1 = arith.constant 0 : i32
    return %c0_i32, %c0_i32_0 : i32, i32
  }
  func.func @transform_8(%arg0: i32) -> (i32, i32) {
    %c0_i32 = arith.constant 0 : i32
    %c0_i32_0 = arith.constant 0 : i32
    %c0_i32_1 = arith.constant 0 : i32
    return %c0_i32, %c0_i32_0 : i32, i32
  }
  func.func @transform_9(%arg0: i32) -> (i32, i32) {
    %c0_i32 = arith.constant 0 : i32
    %c0_i32_0 = arith.constant 0 : i32
    return %arg0, %c0_i32 : i32, i32
  }
}

</mosaic_0001>

<bundles_post_ra>
// kernel: tpu_custom_call.1
= control target key start
LH: loop header
LB: loop body
LE: loop exit
PB: predicated region body
PF: predicated region fallthrough
CT: control target
= control target key end

     0   :  { %14 = vsyncpa [#allocation3], 0  ;;  %s1064_s0 = inlined_call_operand.vmem [shape: f32[16,48], index: 0, kind: input, shape index: {}]   ;;  %s1065_s1 = inlined_call_operand.vmem [shape: f32[16,48], index: 1, kind: input, shape index: {}]   ;;  %s1066_s2 = inlined_call_operand.vmem [shape: f32[48,16], index: 2, kind: input, shape index: {}]   ;;  %s1067_s3 = inlined_call_operand.vmem [shape: f32[48,16], index: 3, kind: input, shape index: {}]   ;;  %s1068_s4 = inlined_call_operand.vmem [shape: f32[8,16], index: 4, kind: input, shape index: {}]   ;;  %s1069_s5 = inlined_call_operand.vmem [shape: f32[16,128], index: 5, kind: input, shape index: {}]   ;;  %s1070_s6 = inlined_call_operand.vmem [shape: f32[16,128], index: 6, kind: input, shape index: {}]   ;;  %s1071_s7 = inlined_call_operand.vmem [shape: f32[16,128], index: 7, kind: input, shape index: {}]   ;;  %s1072_s8 = inlined_call_operand.vmem [shape: f32[8,128], index: 8, kind: input, shape index: {}]   ;;  %s1073_s9 = inlined_call_operand.hbm [shape: f32[16,128], index: 9, kind: output, shape index: {}]  }
   0x1   :  { %16 = vsyncpa [#allocation3 + $0x1], 0  ;;  %s889_s30 = smov 0   ;;  %s891_s10 = smov 0  }
   0x2   :  { %s893_s11 = smov 0   ;;  %s895_s12 = smov 0  }
   0x3 LB: > { %s910_s13 = sadd.s32 4294967295, %s837_s12   ;;  %s712_s14 = sadd.s32 4294967294, %s837_s12   ;;  %s837_s12 = sphi %s895_s12, %s1081_s12   ;;  %s833_s11 = sphi %s893_s11, %s1080_s11   ;;  %s829_s10 = sphi %s891_s10, %s1079_s10   ;;  %s825_s30 = sphi %s889_s30, %s1078_s30  }
   0x4   : > { %s914_s15 = sadd.s32 1, %s837_s12   ;;  %s228_s16 = sadd.s32 1, %s833_s11 }
   0x5   : > { %s225_s17 = ssub.s32 %s837_s12, %s914_s15  ;;  %p238_p0 = scmp.ne.s32.totalorder %s833_s11, %s829_s10 }
   0x6   : > { %p226_p1 = scmp.eq.s32.totalorder %s225_s17, 0  ;;  %p239_p2 = scmp.eq.s32.totalorder %s910_s13, 1 }
   0x7   : > { %p244_p3 = scmp.ne.s32.totalorder %s829_s10, %s825_s30  ;;  %p245_p4 = scmp.eq.s32.totalorder %s712_s14, 1 }
   0x8   : > { %s925_s18 = scalar_select %p226_p1, %s833_s11, %s228_s16  }
   0x9   : > { %p927_p5 = por %p239_p2, %p238_p0  ;;  %p931_p6 = por %p245_p4, %p244_p3 }
   0xa   : > { %1074 = sst [smem:[#allocation5_spill]] %s925_s18  ;;  %p715_p7 = scmp.ge.s32.totalorder %s837_s12, 1 }
   0xb   : > { %p298_p8 = scmp.lt.s32.totalorder %s837_s12, 3 }
   0xd   : > { %p299_p9 = pnand %p715_p7, %p298_p8 }
   0xe   : > { %p337_p10 = scmp.lt.s32.totalorder (!%p299_p9), %s910_s13, 1  ;;  %s727_s17 = sshll.u32 (!%p299_p9), %s910_s13, 3 }
   0xf   : > { %302 = sbr.rel (%p299_p9) target bundleno = 380 (0x17c), region = 56 }
  0x14   : > { %v351_v0 = vld [vmem:[%s1066_s2 + $0x28] sm:$0xff]  ;;  %v350_v2 = vld [vmem:[%s1066_s2 + $0x20] sm:$0xff]  ;;  %v349_v4 = vld [vmem:[%s1066_s2 + $0x18] sm:$0xff]  ;;  %s338_s21 = scalar_select %p337_p10, %s910_s13, 1  ;;  %vm361_vm0 = vcmask 392192   ;;  %vm498_vm9 = vcmask 130048  }
  0x15   : > { %v358_v1 = vld [vmem:[%s1067_s3 + $0x28] sm:$0xff]  ;;  %375 = vmatpush.msra.mxu0 %v351_v0  ;;  %v357_v3 = vld [vmem:[%s1067_s3 + $0x20] sm:$0xff]  ;;  %v356_v5 = vld [vmem:[%s1067_s3 + $0x18] sm:$0xff] }
  0x16   : > { %399 = vmatpush.msra.mxu1 %v358_v1  ;;  %v348_v6 = vld [vmem:[%s1066_s2 + $0x10] sm:$0xff]  ;;  %s717_s26 = sshll.u32 %s338_s21, 3  ;;  %v347_v8 = vld [vmem:[%s1066_s2 + $0x8] sm:$0xff]  ;;  %v346_v10 = vld [vmem:[%s1066_s2] sm:$0xff] }
  0x17   : > { %376 = vmatpush.msra.mxu0 %v350_v2  ;;  %v355_v7 = vld [vmem:[%s1067_s3 + $0x10] sm:$0xff]  ;;  %v354_v9 = vld [vmem:[%s1067_s3 + $0x8] sm:$0xff]  ;;  %s340_s22 = scalar_lea.vmem %s1064_s0, %s717_s26  ;;  %s344_s24 = scalar_lea.vmem %s1065_s1, %s717_s26  ;;  %v353_v11 = vld [vmem:[%s1067_s3] sm:$0xff] }
  0x18   : > { %400 = vmatpush.msra.mxu1 %v357_v3  ;;  %v345_v12 = vld [vmem:[%s340_s22] sm:$0xff]  ;;  %v543_v48 = vld [vmem:[%s1070_s6 + $0x8] sm:$0xff]  ;;  %s334_s26 = sand.u32 1, %s829_s10  }
  0x19   : > { %377 = vmatpush.msra.mxu0 %v349_v4  ;;  %v352_v13 = vld [vmem:[%s344_s24] sm:$0xff]  ;;  %v541_v49 = vld [vmem:[%s1069_s5 + $0x8] sm:$0xff]  ;;  %561 = vmatpush.msra.mxu2 %v543_v48  ;;  %s716_s16 = sshll.u32 %s334_s26, 3  ;;  %s636_s24 = scalar_lea.hbm %s1073_s9, %s727_s17 }
  0x1a   : > { %401 = vmatpush.msra.mxu1 %v356_v5  ;;  %v359_v14 = vld [vmem:[%s1068_s4] sm:$0xff]  ;;  %584 = vmatpush.msra.mxu3 %v541_v49  ;;  %v591_v61 = vld [vmem:[%s1071_s7 + $0x8] sm:$0xff]  ;;  %s336_s21 = scalar_lea.vmem [#allocation2], %s716_s16  ;;  %s640_s27 = sshll.u32 %s636_s24, 4  ;;  %s641_s27 = int_to_ptr.hbm [resolvable:$true] %s640_s27 }
  0x1b   : > { %378 = vmatpush.msra.mxu0 %v348_v6  ;;  %v360_v15 = vperm.slane %v359_v14, 0  ;;  %v385_v16 = vperm.slane %v359_v14, 1  ;;  %v542_v52 = vld [vmem:[%s1070_s6] sm:$0xff]  ;;  %s638_s25 = sshll.u32 %s336_s21, 4  ;;  %s626_s13 = scalar_lea.sflag [#allocation3], %s334_s26  ;;  %s639_s25 = int_to_ptr.vmem [resolvable:$true] %s638_s25 }
  0x1c   : > { %402 = vmatpush.msra.mxu1 %v355_v7  ;;  %v540_v53 = vld [vmem:[%s1069_s5] sm:$0xff]  ;;  %562 = vmatpush.msra.mxu2 %v542_v52  ;;  %s789_s28 = sshra.s32 %s641_s27, 4  ;;  %s795_s17 = scalar_lea.hbm %s1073_s9, 16  ;;  %s790_s28 = int_to_ptr.hbm [resolvable:$true] %s789_s28 }
  0x1d   : > { %379 = vmatpush.msra.mxu0 %v347_v8  ;;  %585 = vmatpush.msra.mxu3 %v540_v53  ;;  %v590_v62 = vld [vmem:[%s1071_s7] sm:$0xff]  ;;  %s791_s18 = scalar_lea.hbm %s790_s28, 8  ;;  %p796_p0 = scmp.lt.s32.totalorder %s790_s28, %s1073_s9 }
  0x1e   : > { %403 = vmatpush.msra.mxu1 %v354_v9  ;;  %609 = vmatpush.msrb.mxu2 %v591_v61  ;;  %p792_p11 = scmp.ne.s32.totalorder %s790_s28, %s791_s18  ;;  %p797_p1 = scmp.lt.s32.totalorder %s795_s17, %s791_s18 }
  0x1f   : > { %380 = vmatpush.msra.mxu0 %v346_v10 }
  0x20   : > { %404 = vmatpush.msra.mxu1 %v353_v11  ;;  %719 = vmatmul.msk.f32.vlgmr.msra.gmra.mxu0 %vm361_vm0, %v345_v12  ;;  %p793_p12 = pnand %p792_p11, %p927_p5  ;;  %p798_p2 = por %p797_p1, %p796_p0 }
  0x21   : > { %720 = vmatmul.msk.f32.vlgmr.msra.gmra.mxu1 %vm361_vm0, %v352_v13  ;;  %610 = vmatpush.msrb.mxu2 %v590_v62 }
  0x22   : > { %p794_p13 = pneg %p793_p12 }
  0x24   : > { %p799_p3 = pnand %p798_p2, %p794_p13 }
  0x9d   : > { %v382_v17 = vpop.f32.mrf.mxu0 }
  0x9e   : > { %v406_v18 = vpop.f32.mrf.mxu1  ;;  %v984_v19 = vadd.f32 %v382_v17, %v360_v15 }
  0x9f   : > { %v986_v20 = vadd.f32 %v406_v18, %v385_v16 }
  0xa0   : > { %v989_v21 = vmul.f32 0.70710677, %v984_v19 }
  0xa1   : > { %v992_v22 = vmul.f32 0.70710677, %v986_v20 }
  0xa2   : > { %v411_v23 = vmul.f32 %v989_v21, %v989_v21 }
  0xa3   : > { %v455_v24 = vmul.f32 %v992_v22, %v992_v22 }
  0xa4   : > { %v412_v25 = vmin.f32 %v411_v23, 16.0 }
  0xa5   : > { %v456_v26 = vmin.f32 %v455_v24, 16.0 }
  0xa6   : > { %v413_v27 = vmul.f32 2.1237322e-06, %v412_v25  ;;  %v424_v28 = vmul.f32 3.8918573e-05, %v412_v25 }
  0xa7   : > { %v457_v29 = vmul.f32 2.1237322e-06, %v456_v26  ;;  %v468_v30 = vmul.f32 3.8918573e-05, %v456_v26 }
  0xa8   : > { %v414_v31 = vadd.f32 0.00028619796, %v413_v27  ;;  %v425_v32 = vadd.f32 0.001143296, %v424_v28 }
  0xa9   : > { %v458_v33 = vadd.f32 0.00028619796, %v457_v29  ;;  %v469_v34 = vadd.f32 0.001143296, %v468_v30 }
  0xaa   : > { %v415_v35 = vmul.f32 %v414_v31, %v412_v25  ;;  %v426_v36 = vmul.f32 %v425_v32, %v412_v25 }
  0xab   : > { %v459_v37 = vmul.f32 %v458_v33, %v456_v26  ;;  %v470_v38 = vmul.f32 %v469_v34, %v456_v26 }
  0xac   : > { %v416_v39 = vadd.f32 0.0036580483, %v415_v35  ;;  %v427_v40 = vadd.f32 0.014752088, %v426_v36 }
  0xad   : > { %v471_v41 = vadd.f32 0.014752088, %v470_v38  ;;  %v460_v43 = vadd.f32 0.0036580483, %v459_v37 }
  0xae   : > { %v428_v42 = vmul.f32 %v427_v40, %v412_v25  ;;  %v417_v45 = vmul.f32 %v416_v39, %v412_v25  ;;  %v409_v39 = vmul.f32 0.5, %v984_v19 }
  0xaf   : > { %v472_v44 = vmul.f32 %v471_v41, %v456_v26  ;;  %v461_v51 = vmul.f32 %v460_v43, %v456_v26  ;;  %v453_v41 = vmul.f32 0.5, %v986_v20 }
  0xb0   : > { %v429_v46 = vadd.f32 0.112945676, %v428_v42  ;;  %v418_v55 = vadd.f32 0.05243302, %v417_v45 }
  0xb1   : > { %v473_v47 = vadd.f32 0.112945676, %v472_v44  ;;  %v462_v59 = vadd.f32 0.05243302, %v461_v51 }
  0xb2   : > { %v430_v50 = vmul.f32 %v429_v46, %v412_v25  ;;  %v419_v63 = vmul.f32 %v418_v55, %v412_v25 }
  0xb3   : > { %v474_v54 = vmul.f32 %v473_v47, %v456_v26  ;;  %v463_v2 = vmul.f32 %v462_v59, %v456_v26 }
  0xb4   : > { %v431_v56 = vadd.f32 0.4994258, %v430_v50  ;;  %v420_v3 = vadd.f32 0.18741608, %v419_v63 }
  0xb5   : > { %v475_v57 = vadd.f32 0.4994258, %v474_v54  ;;  %v464_v4 = vadd.f32 0.18741608, %v463_v2 }
  0xb6   : > { %v432_v58 = vmul.f32 %v431_v56, %v412_v25  ;;  %v421_v6 = vmul.f32 %v420_v3, %v412_v25 }
  0xb7   : > { %v476_v60 = vmul.f32 %v475_v57, %v456_v26  ;;  %v465_v9 = vmul.f32 %v464_v4, %v456_v26 }
  0xb8   : > { %v433_v0 = vadd.f32 1.0, %v432_v58  ;;  %v422_v12 = vadd.f32 1.1283791, %v421_v6 }
  0xb9   : > { %v477_v1 = vadd.f32 1.0, %v476_v60  ;;  %v466_v18 = vadd.f32 1.1283791, %v465_v9 }
  0xba   : > { %769 = vrcp.f32 %v433_v0  ;;  %v445_v13 = vand.u32 2147483648, %v433_v0  ;;  %v443_v16 = vand.u32 2147483647, %v433_v0  ;;  %vm439_vm3 = vweird.f32 %v433_v0 }
  0xbb   : > { %771 = vrcp.f32 %v477_v1  ;;  %v489_v17 = vand.u32 2147483648, %v477_v1  ;;  %v487_v24 = vand.u32 2147483647, %v477_v1  ;;  %vm483_vm5 = vweird.f32 %v477_v1 }
  0xbc   : > { %v446_v25 = vor.u32 1.1754944e-38, %v445_v13  ;;  %v423_v26 = vmul.f32 %v422_v12, %v989_v21  ;;  %vm444_vm6 = vcmp.eq.f32.partialorder %v443_v16, 8.507059e+37  ;;  %v467_v32 = vmul.f32 %v466_v18, %v992_v22 }
  0xbd   : > { %v490_v30 = vor.u32 1.1754944e-38, %v489_v17  ;;  %vm488_vm8 = vcmp.eq.f32.partialorder %v487_v24, 8.507059e+37 }
  0xc0   : > { %v770_v5 = vpop.eup %769 }
  0xc1   : > { %v772_v7 = vpop.eup %771  ;;  %v435_v8 = vmul.f32 %v770_v5, %v433_v0  ;;  %vm440_vm1 = vweird.f32 %v770_v5 }
  0xc2   : > { %v479_v10 = vmul.f32 %v772_v7, %v477_v1  ;;  %vm484_vm2 = vweird.f32 %v772_v7  ;;  %vm441_vm4 = vmor %vm439_vm3, %vm440_vm1 }
  0xc3   : > { %v436_v11 = vsub.f32 1.0, %v435_v8  ;;  %vm485_vm7 = vmor %vm483_vm5, %vm484_vm2 }
  0xc4   : > { %v480_v14 = vsub.f32 1.0, %v479_v10  ;;  %v616_v10 = vld [vmem:[%s1072_s8] sm:$0xff] }
  0xc5   : > { %v437_v15 = vmul.f32 %v770_v5, %v436_v11  ;;  %v622_v24 = vperm.slane %v616_v10, 1 }
  0xc6   : > { %v481_v23 = vmul.f32 %v772_v7, %v480_v14  ;;  %v619_v14 = vperm.slane %v616_v10, 0 }
  0xc7   : > { %v438_v27 = vadd.f32 %v770_v5, %v437_v15 }
  0xc8   : > { %v482_v28 = vadd.f32 %v772_v7, %v481_v23 }
  0xc9   : > { %v442_v29 = vsel %vm441_vm4, %v770_v5, %v438_v27 }
  0xca   : > { %v447_v31 = vsel %vm444_vm6, %v446_v25, %v442_v29  ;;  %v486_v33 = vsel %vm485_vm7, %v772_v7, %v482_v28 }
  0xcb   : > { %v448_v34 = vmul.f32 %v447_v31, %v423_v26  ;;  %v491_v35 = vsel %vm488_vm8, %v490_v30, %v486_v33 }
  0xcc   : > { %v492_v36 = vmul.f32 %v491_v35, %v467_v32 }
  0xcd   : > { %v721_v37 = vclamps-f32 %v448_v34, 1.0 }
  0xce   : > { %v722_v38 = vclamps-f32 %v492_v36, 1.0 }
  0xcf   : > { %v451_v40 = vadd.f32 1.0, %v721_v37 }
  0xd0   : > { %v495_v21 = vadd.f32 1.0, %v722_v38 }
  0xd1   : > { %v452_v42 = vmul.f32 %v451_v40, %v409_v39 }
  0xd2   : > { %v496_v43 = vmul.f32 %v495_v21, %v453_v41 }
  0xd3   : > { %724 = vmatmul.msk.f32.vlgmr.msra.gmra.mxu3 %vm498_vm9, %v452_v42  ;;  %v499_v22 = vsel %vm498_vm9, %v452_v42, 0.0  ;;  %v510_v47 = vmul.f32 %v452_v42, %v452_v42 }
  0xd4   : > { %723 = vmatmul.msk.f32.vlgmr.msra.gmra.mxu2 %vm498_vm9, %v496_v43  ;;  %500 = vadd.xlane.f32.xlu0 %v499_v22  ;;  %v514_v44 = vmul.f32 %v496_v43, %v496_v43  ;;  %v497_v45 = vmul.f32 %v496_v43, %v452_v42  ;;  %v502_v48 = vsel %vm498_vm9, %v496_v43, 0.0 }
  0xd5   : > { %v511_v50 = vsel %vm498_vm9, %v510_v47, 0.0 }
  0xd6   : > { %v515_v46 = vsel %vm498_vm9, %v514_v44, 0.0  ;;  %v506_v19 = vsel %vm498_vm9, %v497_v45, 0.0  ;;  %v519_v20 = vmul.f32 %v497_v45, %v497_v45 }
  0xd7   : > { %516 = vadd.xlane.f32.xlu2 %v515_v46  ;;  %507 = vadd.xlane.f32.xlu1 %v506_v19 }
  0xd8   : > { %v520_v49 = vsel %vm498_vm9, %v519_v20, 0.0 }
  0xdc   : > { %725 = vmatmul.msk.f32.vlgmr.msrb.gmra.mxu2 %vm498_vm9, %v497_v45  ;;  %503 = vadd.xlane.f32.xlu0 %v502_v48 }
  0xdf   : > { %521 = vadd.xlane.f32.xlu2 %v520_v49  ;;  %512 = vadd.xlane.f32.xlu1 %v511_v50 }
 0x147   : > { %v501_v51 = vpop.xlane.xlu0 %500 }
 0x14a   : > { %v517_v52 = vpop.xlane.xlu2 %516  ;;  %v508_v53 = vpop.xlane.xlu1 %507 }
 0x14f   : > { %v504_v54 = vpop.xlane.xlu0 %503 }
 0x150   : > { %v505_v55 = vadd.f32 %v504_v54, %v501_v51 }
 0x152   : > { %v509_v56 = vadd.f32 %v508_v53, %v505_v55  ;;  %v513_v57 = vpop.xlane.xlu1 %512  ;;  %v522_v60 = vpop.xlane.xlu2 %521 }
 0x153   : > { %v518_v58 = vadd.f32 %v517_v52, %v513_v57 }
 0x154   : > { %v524_v59 = vmul.f32 0.020833334, %v509_v56 }
 0x155   : > { %v523_v61 = vadd.f32 %v522_v60, %v518_v58 }
 0x156   : > { %v526_v62 = vmul.f32 %v524_v59, %v524_v59  ;;  %v587_v8 = vpop.f32.mrf.mxu3 }
 0x157   : > { %v525_v63 = vmul.f32 0.020833334, %v523_v61  ;;  %v564_v3 = vpop.f32.mrf.mxu2 }
 0x158   : > { %v588_v13 = vadd.f32 %v587_v8, %v564_v3 }
 0x159   : > { %v527_v0 = vsub.f32 %v525_v63, %v526_v62 }
 0x15b   : > { %v528_v1 = vmax.f32 %v527_v0, 0.0 }
 0x15d   : > { %v529_v2 = vadd.f32 1e-12, %v528_v1 }
 0x15f   : > { %773 = vrsqrt.f32 %v529_v2  ;;  %vm536_vm11 = vweird.f32 %v529_v2  ;;  %v612_v12 = vpop.f32.mrf.mxu2 }
 0x160   : > { %v615_v16 = vadd.f32 %v612_v12, %v588_v13 }
 0x165   : > { %v774_v4 = vpop.eup %773 }
 0x166   : > { %v531_v5 = vmul.f32 %v774_v4, %v529_v2  ;;  %vm537_vm10 = vweird.f32 %v774_v4 }
 0x167   : > { %vm538_vm12 = vmor %vm536_vm11, %vm537_vm10 }
 0x168   : > { %v532_v6 = vmul.f32 %v774_v4, %v531_v5 }
 0x16a   : > { %v533_v7 = vmul.f32 0.5, %v532_v6 }
 0x16c   : > { %v534_v9 = vsub.f32 1.5, %v533_v7 }
 0x16e   : > { %v535_v11 = vmul.f32 %v774_v4, %v534_v9 }
 0x170   : > { %v539_v15 = vsel %vm538_vm12, %v774_v4, %v535_v11 }
 0x171   : > { %v618_v17 = vmul.f32 %v539_v15, %v524_v59  ;;  %v617_v18 = vmul.f32 %v615_v16, %v539_v15 }
 0x173   : > { %v620_v23 = vmul.f32 %v619_v14, %v618_v17 }
 0x175   : > { %v621_v27 = vsub.f32 %v617_v18, %v620_v23 }
 0x177   : > { %v623_v25 = vadd.f32 %v622_v24, %v621_v27 }
 0x179   : > { %624 = vst [vmem:[%s336_s21] sm:$0xff] %v623_v25 }
 0x17a   : > { %802 = shalt.err (!%p799_p3)
}
 0x17b   : > { %730 = dma.vmem_to_hbm [thread:$0]  (%p927_p5), %s639_s25, 128, %s641_s27, %s626_s13  }
 0x17c PF: > { %p736_p4 = scmp.ge.s32.totalorder %s837_s12, 2  ;;  %s652_s26 = sand.u32 1, %s825_s30  }
 0x17d   : > { %s653_s23 = scalar_lea.sflag [#allocation3], %s652_s26 }
 0x17e   : > { %p733_p7 = pnand %p736_p4, %p931_p6 }
 0x180   : > { %p734_p8 = pneg %p733_p7 }
 0x182   : > { %820 = dma.done.wait (%p734_p8), %s653_s23, 128  }
 0x183   : > { %822 = vsyncadd (%p734_p8), %s653_s23, 4294967168  ;;  %s1077_s24 = sld [smem:[#allocation5_spill]]  ;;  %p19_p9 = scmp.ge.s32.totalorder %s914_s15, 4  }
 0x184   : > { %s1078_s30 = smov %s829_s10  ;;  %s1079_s10 = smov %s833_s11 }
 0x185   : > { %s1081_s12 = smov %s914_s15  ;;  %21 = sbr.rel (!%p19_p9) target bundleno = 3 (0x3), region = 94 }
 0x189   : > { %s1080_s11 = smov %s1077_s24 }
 0x18a   :  { %659 = vsyncpa [#allocation3], 1 }
 0x18b   :  { %661 = vsyncpa [#allocation3 + $0x1], 1 }

// kernel: tpu_custom_call.1
= control target key start
LH: loop header
LB: loop body
LE: loop exit
PB: predicated region body
PF: predicated region fallthrough
CT: control target
= control target key end

     0   :  { %14 = vsyncpa [#allocation3], 0  ;;  %s1064_s0 = inlined_call_operand.vmem [shape: f32[16,48], index: 0, kind: input, shape index: {}]   ;;  %s1065_s1 = inlined_call_operand.vmem [shape: f32[16,48], index: 1, kind: input, shape index: {}]   ;;  %s1066_s2 = inlined_call_operand.vmem [shape: f32[48,16], index: 2, kind: input, shape index: {}]   ;;  %s1067_s3 = inlined_call_operand.vmem [shape: f32[48,16], index: 3, kind: input, shape index: {}]   ;;  %s1068_s4 = inlined_call_operand.vmem [shape: f32[8,16], index: 4, kind: input, shape index: {}]   ;;  %s1069_s5 = inlined_call_operand.vmem [shape: f32[16,128], index: 5, kind: input, shape index: {}]   ;;  %s1070_s6 = inlined_call_operand.vmem [shape: f32[16,128], index: 6, kind: input, shape index: {}]   ;;  %s1071_s7 = inlined_call_operand.vmem [shape: f32[16,128], index: 7, kind: input, shape index: {}]   ;;  %s1072_s8 = inlined_call_operand.vmem [shape: f32[8,128], index: 8, kind: input, shape index: {}]   ;;  %s1073_s9 = inlined_call_operand.hbm [shape: f32[16,128], index: 9, kind: output, shape index: {}]  }
   0x1   :  { %16 = vsyncpa [#allocation3 + $0x1], 0  ;;  %s889_s30 = smov 0   ;;  %s891_s10 = smov 0  }
   0x2   :  { %s893_s11 = smov 0   ;;  %s895_s12 = smov 0  }
   0x3 LB: > { %s910_s13 = sadd.s32 4294967295, %s837_s12   ;;  %s712_s14 = sadd.s32 4294967294, %s837_s12   ;;  %s837_s12 = sphi %s895_s12, %s1081_s12   ;;  %s833_s11 = sphi %s893_s11, %s1080_s11   ;;  %s829_s10 = sphi %s891_s10, %s1079_s10   ;;  %s825_s30 = sphi %s889_s30, %s1078_s30  }
   0x4   : > { %s914_s15 = sadd.s32 1, %s837_s12   ;;  %s228_s16 = sadd.s32 1, %s833_s11 }
   0x5   : > { %s225_s17 = ssub.s32 %s837_s12, %s914_s15  ;;  %p238_p0 = scmp.ne.s32.totalorder %s833_s11, %s829_s10 }
   0x6   : > { %p226_p1 = scmp.eq.s32.totalorder %s225_s17, 0  ;;  %p239_p2 = scmp.eq.s32.totalorder %s910_s13, 1 }
   0x7   : > { %p244_p3 = scmp.ne.s32.totalorder %s829_s10, %s825_s30  ;;  %p245_p4 = scmp.eq.s32.totalorder %s712_s14, 1 }
   0x8   : > { %s925_s18 = scalar_select %p226_p1, %s833_s11, %s228_s16  }
   0x9   : > { %p927_p5 = por %p239_p2, %p238_p0  ;;  %p931_p6 = por %p245_p4, %p244_p3 }
   0xa   : > { %1074 = sst [smem:[#allocation5_spill]] %s925_s18  ;;  %p715_p7 = scmp.ge.s32.totalorder %s837_s12, 1 }
   0xb   : > { %p298_p8 = scmp.lt.s32.totalorder %s837_s12, 3 }
   0xd   : > { %p299_p9 = pnand %p715_p7, %p298_p8 }
   0xe   : > { %p337_p10 = scmp.lt.s32.totalorder (!%p299_p9), %s910_s13, 1  ;;  %s727_s17 = sshll.u32 (!%p299_p9), %s910_s13, 3 }
   0xf   : > { %302 = sbr.rel (%p299_p9) target bundleno = 380 (0x17c), region = 56 }
  0x14   : > { %v351_v0 = vld [vmem:[%s1066_s2 + $0x28] sm:$0xff]  ;;  %v350_v2 = vld [vmem:[%s1066_s2 + $0x20] sm:$0xff]  ;;  %v349_v4 = vld [vmem:[%s1066_s2 + $0x18] sm:$0xff]  ;;  %s338_s21 = scalar_select %p337_p10, %s910_s13, 1  ;;  %vm361_vm0 = vcmask 392192   ;;  %vm498_vm9 = vcmask 130048  }
  0x15   : > { %v358_v1 = vld [vmem:[%s1067_s3 + $0x28] sm:$0xff]  ;;  %375 = vmatpush.msra.mxu0 %v351_v0  ;;  %v357_v3 = vld [vmem:[%s1067_s3 + $0x20] sm:$0xff]  ;;  %v356_v5 = vld [vmem:[%s1067_s3 + $0x18] sm:$0xff] }
  0x16   : > { %399 = vmatpush.msra.mxu1 %v358_v1  ;;  %v348_v6 = vld [vmem:[%s1066_s2 + $0x10] sm:$0xff]  ;;  %s717_s26 = sshll.u32 %s338_s21, 3  ;;  %v347_v8 = vld [vmem:[%s1066_s2 + $0x8] sm:$0xff]  ;;  %v346_v10 = vld [vmem:[%s1066_s2] sm:$0xff] }
  0x17   : > { %376 = vmatpush.msra.mxu0 %v350_v2  ;;  %v355_v7 = vld [vmem:[%s1067_s3 + $0x10] sm:$0xff]  ;;  %v354_v9 = vld [vmem:[%s1067_s3 + $0x8] sm:$0xff]  ;;  %s340_s22 = scalar_lea.vmem %s1064_s0, %s717_s26  ;;  %s344_s24 = scalar_lea.vmem %s1065_s1, %s717_s26  ;;  %v353_v11 = vld [vmem:[%s1067_s3] sm:$0xff] }
  0x18   : > { %400 = vmatpush.msra.mxu1 %v357_v3  ;;  %v345_v12 = vld [vmem:[%s340_s22] sm:$0xff]  ;;  %v543_v48 = vld [vmem:[%s1070_s6 + $0x8] sm:$0xff]  ;;  %s334_s26 = sand.u32 1, %s829_s10  }
  0x19   : > { %377 = vmatpush.msra.mxu0 %v349_v4  ;;  %v352_v13 = vld [vmem:[%s344_s24] sm:$0xff]  ;;  %v541_v49 = vld [vmem:[%s1069_s5 + $0x8] sm:$0xff]  ;;  %561 = vmatpush.msra.mxu2 %v543_v48  ;;  %s716_s16 = sshll.u32 %s334_s26, 3  ;;  %s636_s24 = scalar_lea.hbm %s1073_s9, %s727_s17 }
  0x1a   : > { %401 = vmatpush.msra.mxu1 %v356_v5  ;;  %v359_v14 = vld [vmem:[%s1068_s4] sm:$0xff]  ;;  %584 = vmatpush.msra.mxu3 %v541_v49  ;;  %v591_v61 = vld [vmem:[%s1071_s7 + $0x8] sm:$0xff]  ;;  %s336_s21 = scalar_lea.vmem [#allocation2], %s716_s16  ;;  %s640_s27 = sshll.u32 %s636_s24, 4  ;;  %s641_s27 = int_to_ptr.hbm [resolvable:$true] %s640_s27 }
  0x1b   : > { %378 = vmatpush.msra.mxu0 %v348_v6  ;;  %v360_v15 = vperm.slane %v359_v14, 0  ;;  %v385_v16 = vperm.slane %v359_v14, 1  ;;  %v542_v52 = vld [vmem:[%s1070_s6] sm:$0xff]  ;;  %s638_s25 = sshll.u32 %s336_s21, 4  ;;  %s626_s13 = scalar_lea.sflag [#allocation3], %s334_s26  ;;  %s639_s25 = int_to_ptr.vmem [resolvable:$true] %s638_s25 }
  0x1c   : > { %402 = vmatpush.msra.mxu1 %v355_v7  ;;  %v540_v53 = vld [vmem:[%s1069_s5] sm:$0xff]  ;;  %562 = vmatpush.msra.mxu2 %v542_v52  ;;  %s789_s28 = sshra.s32 %s641_s27, 4  ;;  %s795_s17 = scalar_lea.hbm %s1073_s9, 16  ;;  %s790_s28 = int_to_ptr.hbm [resolvable:$true] %s789_s28 }
  0x1d   : > { %379 = vmatpush.msra.mxu0 %v347_v8  ;;  %585 = vmatpush.msra.mxu3 %v540_v53  ;;  %v590_v62 = vld [vmem:[%s1071_s7] sm:$0xff]  ;;  %s791_s18 = scalar_lea.hbm %s790_s28, 8  ;;  %p796_p0 = scmp.lt.s32.totalorder %s790_s28, %s1073_s9 }
  0x1e   : > { %403 = vmatpush.msra.mxu1 %v354_v9  ;;  %609 = vmatpush.msrb.mxu2 %v591_v61  ;;  %p792_p11 = scmp.ne.s32.totalorder %s790_s28, %s791_s18  ;;  %p797_p1 = scmp.lt.s32.totalorder %s795_s17, %s791_s18 }
  0x1f   : > { %380 = vmatpush.msra.mxu0 %v346_v10 }
  0x20   : > { %404 = vmatpush.msra.mxu1 %v353_v11  ;;  %719 = vmatmul.msk.f32.vlgmr.msra.gmra.mxu0 %vm361_vm0, %v345_v12  ;;  %p793_p12 = pnand %p792_p11, %p927_p5  ;;  %p798_p2 = por %p797_p1, %p796_p0 }
  0x21   : > { %720 = vmatmul.msk.f32.vlgmr.msra.gmra.mxu1 %vm361_vm0, %v352_v13  ;;  %610 = vmatpush.msrb.mxu2 %v590_v62 }
  0x22   : > { %p794_p13 = pneg %p793_p12 }
  0x24   : > { %p799_p3 = pnand %p798_p2, %p794_p13 }
  0x9d   : > { %v382_v17 = vpop.f32.mrf.mxu0 }
  0x9e   : > { %v406_v18 = vpop.f32.mrf.mxu1  ;;  %v984_v19 = vadd.f32 %v382_v17, %v360_v15 }
  0x9f   : > { %v986_v20 = vadd.f32 %v406_v18, %v385_v16 }
  0xa0   : > { %v989_v21 = vmul.f32 0.70710677, %v984_v19 }
  0xa1   : > { %v992_v22 = vmul.f32 0.70710677, %v986_v20 }
  0xa2   : > { %v411_v23 = vmul.f32 %v989_v21, %v989_v21 }
  0xa3   : > { %v455_v24 = vmul.f32 %v992_v22, %v992_v22 }
  0xa4   : > { %v412_v25 = vmin.f32 %v411_v23, 16.0 }
  0xa5   : > { %v456_v26 = vmin.f32 %v455_v24, 16.0 }
  0xa6   : > { %v413_v27 = vmul.f32 2.1237322e-06, %v412_v25  ;;  %v424_v28 = vmul.f32 3.8918573e-05, %v412_v25 }
  0xa7   : > { %v457_v29 = vmul.f32 2.1237322e-06, %v456_v26  ;;  %v468_v30 = vmul.f32 3.8918573e-05, %v456_v26 }
  0xa8   : > { %v414_v31 = vadd.f32 0.00028619796, %v413_v27  ;;  %v425_v32 = vadd.f32 0.001143296, %v424_v28 }
  0xa9   : > { %v458_v33 = vadd.f32 0.00028619796, %v457_v29  ;;  %v469_v34 = vadd.f32 0.001143296, %v468_v30 }
  0xaa   : > { %v415_v35 = vmul.f32 %v414_v31, %v412_v25  ;;  %v426_v36 = vmul.f32 %v425_v32, %v412_v25 }
  0xab   : > { %v459_v37 = vmul.f32 %v458_v33, %v456_v26  ;;  %v470_v38 = vmul.f32 %v469_v34, %v456_v26 }
  0xac   : > { %v416_v39 = vadd.f32 0.0036580483, %v415_v35  ;;  %v427_v40 = vadd.f32 0.014752088, %v426_v36 }
  0xad   : > { %v471_v41 = vadd.f32 0.014752088, %v470_v38  ;;  %v460_v43 = vadd.f32 0.0036580483, %v459_v37 }
  0xae   : > { %v428_v42 = vmul.f32 %v427_v40, %v412_v25  ;;  %v417_v45 = vmul.f32 %v416_v39, %v412_v25  ;;  %v409_v39 = vmul.f32 0.5, %v984_v19 }
  0xaf   : > { %v472_v44 = vmul.f32 %v471_v41, %v456_v26  ;;  %v461_v51 = vmul.f32 %v460_v43, %v456_v26  ;;  %v453_v41 = vmul.f32 0.5, %v986_v20 }
  0xb0   : > { %v429_v46 = vadd.f32 0.112945676, %v428_v42  ;;  %v418_v55 = vadd.f32 0.05243302, %v417_v45 }
  0xb1   : > { %v473_v47 = vadd.f32 0.112945676, %v472_v44  ;;  %v462_v59 = vadd.f32 0.05243302, %v461_v51 }
  0xb2   : > { %v430_v50 = vmul.f32 %v429_v46, %v412_v25  ;;  %v419_v63 = vmul.f32 %v418_v55, %v412_v25 }
  0xb3   : > { %v474_v54 = vmul.f32 %v473_v47, %v456_v26  ;;  %v463_v2 = vmul.f32 %v462_v59, %v456_v26 }
  0xb4   : > { %v431_v56 = vadd.f32 0.4994258, %v430_v50  ;;  %v420_v3 = vadd.f32 0.18741608, %v419_v63 }
  0xb5   : > { %v475_v57 = vadd.f32 0.4994258, %v474_v54  ;;  %v464_v4 = vadd.f32 0.18741608, %v463_v2 }
  0xb6   : > { %v432_v58 = vmul.f32 %v431_v56, %v412_v25  ;;  %v421_v6 = vmul.f32 %v420_v3, %v412_v25 }
  0xb7   : > { %v476_v60 = vmul.f32 %v475_v57, %v456_v26  ;;  %v465_v9 = vmul.f32 %v464_v4, %v456_v26 }
  0xb8   : > { %v433_v0 = vadd.f32 1.0, %v432_v58  ;;  %v422_v12 = vadd.f32 1.1283791, %v421_v6 }
  0xb9   : > { %v477_v1 = vadd.f32 1.0, %v476_v60  ;;  %v466_v18 = vadd.f32 1.1283791, %v465_v9 }
  0xba   : > { %769 = vrcp.f32 %v433_v0  ;;  %v445_v13 = vand.u32 2147483648, %v433_v0  ;;  %v443_v16 = vand.u32 2147483647, %v433_v0  ;;  %vm439_vm3 = vweird.f32 %v433_v0 }
  0xbb   : > { %771 = vrcp.f32 %v477_v1  ;;  %v489_v17 = vand.u32 2147483648, %v477_v1  ;;  %v487_v24 = vand.u32 2147483647, %v477_v1  ;;  %vm483_vm5 = vweird.f32 %v477_v1 }
  0xbc   : > { %v446_v25 = vor.u32 1.1754944e-38, %v445_v13  ;;  %v423_v26 = vmul.f32 %v422_v12, %v989_v21  ;;  %vm444_vm6 = vcmp.eq.f32.partialorder %v443_v16, 8.507059e+37  ;;  %v467_v32 = vmul.f32 %v466_v18, %v992_v22 }
  0xbd   : > { %v490_v30 = vor.u32 1.1754944e-38, %v489_v17  ;;  %vm488_vm8 = vcmp.eq.f32.partialorder %v487_v24, 8.507059e+37 }
  0xc0   : > { %v770_v5 = vpop.eup %769 }
  0xc1   : > { %v772_v7 = vpop.eup %771  ;;  %v435_v8 = vmul.f32 %v770_v5, %v433_v0  ;;  %vm440_vm1 = vweird.f32 %v770_v5 }
  0xc2   : > { %v479_v10 = vmul.f32 %v772_v7, %v477_v1  ;;  %vm484_vm2 = vweird.f32 %v772_v7  ;;  %vm441_vm4 = vmor %vm439_vm3, %vm440_vm1 }
  0xc3   : > { %v436_v11 = vsub.f32 1.0, %v435_v8  ;;  %vm485_vm7 = vmor %vm483_vm5, %vm484_vm2 }
  0xc4   : > { %v480_v14 = vsub.f32 1.0, %v479_v10  ;;  %v616_v10 = vld [vmem:[%s1072_s8] sm:$0xff] }
  0xc5   : > { %v437_v15 = vmul.f32 %v770_v5, %v436_v11  ;;  %v622_v24 = vperm.slane %v616_v10, 1 }
  0xc6   : > { %v481_v23 = vmul.f32 %v772_v7, %v480_v14  ;;  %v619_v14 = vperm.slane %v616_v10, 0 }
  0xc7   : > { %v438_v27 = vadd.f32 %v770_v5, %v437_v15 }
  0xc8   : > { %v482_v28 = vadd.f32 %v772_v7, %v481_v23 }
  0xc9   : > { %v442_v29 = vsel %vm441_vm4, %v770_v5, %v438_v27 }
  0xca   : > { %v447_v31 = vsel %vm444_vm6, %v446_v25, %v442_v29  ;;  %v486_v33 = vsel %vm485_vm7, %v772_v7, %v482_v28 }
  0xcb   : > { %v448_v34 = vmul.f32 %v447_v31, %v423_v26  ;;  %v491_v35 = vsel %vm488_vm8, %v490_v30, %v486_v33 }
  0xcc   : > { %v492_v36 = vmul.f32 %v491_v35, %v467_v32 }
  0xcd   : > { %v721_v37 = vclamps-f32 %v448_v34, 1.0 }
  0xce   : > { %v722_v38 = vclamps-f32 %v492_v36, 1.0 }
  0xcf   : > { %v451_v40 = vadd.f32 1.0, %v721_v37 }
  0xd0   : > { %v495_v21 = vadd.f32 1.0, %v722_v38 }
  0xd1   : > { %v452_v42 = vmul.f32 %v451_v40, %v409_v39 }
  0xd2   : > { %v496_v43 = vmul.f32 %v495_v21, %v453_v41 }
  0xd3   : > { %724 = vmatmul.msk.f32.vlgmr.msra.gmra.mxu3 %vm498_vm9, %v452_v42  ;;  %v499_v22 = vsel %vm498_vm9, %v452_v42, 0.0  ;;  %v510_v47 = vmul.f32 %v452_v42, %v452_v42 }
  0xd4   : > { %723 = vmatmul.msk.f32.vlgmr.msra.gmra.mxu2 %vm498_vm9, %v496_v43  ;;  %500 = vadd.xlane.f32.xlu0 %v499_v22  ;;  %v514_v44 = vmul.f32 %v496_v43, %v496_v43  ;;  %v497_v45 = vmul.f32 %v496_v43, %v452_v42  ;;  %v502_v48 = vsel %vm498_vm9, %v496_v43, 0.0 }
  0xd5   : > { %v511_v50 = vsel %vm498_vm9, %v510_v47, 0.0 }
  0xd6   : > { %v515_v46 = vsel %vm498_vm9, %v514_v44, 0.0  ;;  %v506_v19 = vsel %vm498_vm9, %v497_v45, 0.0  ;;  %v519_v20 = vmul.f32 %v497_v45, %v497_v45 }
  0xd7   : > { %516 = vadd.xlane.f32.xlu2 %v515_v46  ;;  %507 = vadd.xlane.f32.xlu1 %v506_v19 }
  0xd8   : > { %v520_v49 = vsel %vm498_vm9, %v519_v20, 0.0 }
  0xdc   : > { %725 = vmatmul.msk.f32.vlgmr.msrb.gmra.mxu2 %vm498_vm9, %v497_v45  ;;  %503 = vadd.xlane.f32.xlu0 %v502_v48 }
  0xdf   : > { %521 = vadd.xlane.f32.xlu2 %v520_v49  ;;  %512 = vadd.xlane.f32.xlu1 %v511_v50 }
 0x147   : > { %v501_v51 = vpop.xlane.xlu0 %500 }
 0x14a   : > { %v517_v52 = vpop.xlane.xlu2 %516  ;;  %v508_v53 = vpop.xlane.xlu1 %507 }
 0x14f   : > { %v504_v54 = vpop.xlane.xlu0 %503 }
 0x150   : > { %v505_v55 = vadd.f32 %v504_v54, %v501_v51 }
 0x152   : > { %v509_v56 = vadd.f32 %v508_v53, %v505_v55  ;;  %v513_v57 = vpop.xlane.xlu1 %512  ;;  %v522_v60 = vpop.xlane.xlu2 %521 }
 0x153   : > { %v518_v58 = vadd.f32 %v517_v52, %v513_v57 }
 0x154   : > { %v524_v59 = vmul.f32 0.020833334, %v509_v56 }
 0x155   : > { %v523_v61 = vadd.f32 %v522_v60, %v518_v58 }
 0x156   : > { %v526_v62 = vmul.f32 %v524_v59, %v524_v59  ;;  %v587_v8 = vpop.f32.mrf.mxu3 }
 0x157   : > { %v525_v63 = vmul.f32 0.020833334, %v523_v61  ;;  %v564_v3 = vpop.f32.mrf.mxu2 }
 0x158   : > { %v588_v13 = vadd.f32 %v587_v8, %v564_v3 }
 0x159   : > { %v527_v0 = vsub.f32 %v525_v63, %v526_v62 }
 0x15b   : > { %v528_v1 = vmax.f32 %v527_v0, 0.0 }
 0x15d   : > { %v529_v2 = vadd.f32 1e-12, %v528_v1 }
 0x15f   : > { %773 = vrsqrt.f32 %v529_v2  ;;  %vm536_vm11 = vweird.f32 %v529_v2  ;;  %v612_v12 = vpop.f32.mrf.mxu2 }
 0x160   : > { %v615_v16 = vadd.f32 %v612_v12, %v588_v13 }
 0x165   : > { %v774_v4 = vpop.eup %773 }
 0x166   : > { %v531_v5 = vmul.f32 %v774_v4, %v529_v2  ;;  %vm537_vm10 = vweird.f32 %v774_v4 }
 0x167   : > { %vm538_vm12 = vmor %vm536_vm11, %vm537_vm10 }
 0x168   : > { %v532_v6 = vmul.f32 %v774_v4, %v531_v5 }
 0x16a   : > { %v533_v7 = vmul.f32 0.5, %v532_v6 }
 0x16c   : > { %v534_v9 = vsub.f32 1.5, %v533_v7 }
 0x16e   : > { %v535_v11 = vmul.f32 %v774_v4, %v534_v9 }
 0x170   : > { %v539_v15 = vsel %vm538_vm12, %v774_v4, %v535_v11 }
 0x171   : > { %v618_v17 = vmul.f32 %v539_v15, %v524_v59  ;;  %v617_v18 = vmul.f32 %v615_v16, %v539_v15 }
 0x173   : > { %v620_v23 = vmul.f32 %v619_v14, %v618_v17 }
 0x175   : > { %v621_v27 = vsub.f32 %v617_v18, %v620_v23 }
 0x177   : > { %v623_v25 = vadd.f32 %v622_v24, %v621_v27 }
 0x179   : > { %624 = vst [vmem:[%s336_s21] sm:$0xff] %v623_v25 }
 0x17a   : > { %802 = shalt.err (!%p799_p3)
}
 0x17b   : > { %730 = dma.vmem_to_hbm [thread:$0]  (%p927_p5), %s639_s25, 128, %s641_s27, %s626_s13  }
 0x17c PF: > { %p736_p4 = scmp.ge.s32.totalorder %s837_s12, 2  ;;  %s652_s26 = sand.u32 1, %s825_s30  }
 0x17d   : > { %s653_s23 = scalar_lea.sflag [#allocation3], %s652_s26 }
 0x17e   : > { %p733_p7 = pnand %p736_p4, %p931_p6 }
 0x180   : > { %p734_p8 = pneg %p733_p7 }
 0x182   : > { %820 = dma.done.wait (%p734_p8), %s653_s23, 128  }
 0x183   : > { %822 = vsyncadd (%p734_p8), %s653_s23, 4294967168  ;;  %s1077_s24 = sld [smem:[#allocation5_spill]]  ;;  %p19_p9 = scmp.ge.s32.totalorder %s914_s15, 4  }
 0x184   : > { %s1078_s30 = smov %s829_s10  ;;  %s1079_s10 = smov %s833_s11 }
 0x185   : > { %s1081_s12 = smov %s914_s15  ;;  %21 = sbr.rel (!%p19_p9) target bundleno = 3 (0x3), region = 94 }
 0x189   : > { %s1080_s11 = smov %s1077_s24 }
 0x18a   :  { %659 = vsyncpa [#allocation3], 1 }
 0x18b   :  { %661 = vsyncpa [#allocation3 + $0x1], 1 }

</bundles_post_ra>
